<compile_context>
chip_gen: v5e
topology: v5e:2x2
jax: 0.10.0
libtpu: 0.0.40
codegen_flags: <defaults>
</compile_context>

<pallas_src>
import jax
import jax.numpy as jnp
from jax import lax
from jax.experimental import pallas as pl
from jax.experimental.pallas import tpu as pltpu

_BN_EPS = 1e-5
_LANE = 128
_SUBLANE = 8  # f32 sublane granule: contraction-only dims need no more than this


def _round_up(n, m):
    return ((n + m - 1) // m) * m


def _make_mlp_kernel(bn_flags):
    """Fused whole-MLP kernel for a fixed (static) layer structure.

    Ref order: x, then per layer (w_t[, gamma, beta] | w_t, b), then the output ref.
    Layer structure (which layers have BN/ReLU) is resolved at trace time.
    """

    def kernel(*refs):
        x_ref = refs[0]
        o_ref = refs[-1]
        param_refs = refs[1:-1]

        h = x_ref[...]  # activations stay f32 between layers
        idx = 0
        for has_bn in bn_flags:
            if has_bn:
                w_ref, g_ref, be_ref = param_refs[idx:idx + 3]
                idx += 3
                # bf16 operands right at the dot (MXU-native on v6e/v7x, fewer passes);
                # f32 accumulation via preferred_element_type.  No bias: BN cancels it.
                y = jnp.dot(h.astype(jnp.bfloat16), w_ref[...],
                            preferred_element_type=jnp.float32)
                # BatchNorm1d (training-mode batch stats) folded to one scale/shift.
                mean = jnp.mean(y, axis=0, keepdims=True)                       # (1,N)
                var = jnp.maximum(
                    jnp.mean(y * y, axis=0, keepdims=True) - mean * mean, 0.0)  # (1,N)
                scale = g_ref[...] * lax.rsqrt(var + _BN_EPS)                   # EUP
                shift = be_ref[...] - mean * scale
                h = jnp.maximum(y * scale + shift, 0.0)                         # BN+ReLU
            else:
                w_ref, b_ref = param_refs[idx:idx + 2]
                idx += 2
                h = jnp.dot(h.astype(jnp.bfloat16), w_ref[...],
                            preferred_element_type=jnp.float32) + b_ref[...]

        o_ref[...] = h.astype(o_ref.dtype)

    return kernel


def init_mlp_params(key, hidden_size, last_activation=True):
    """Init mirroring PyTorch defaults.

    Returns kernel-ready params (padded, pre-transposed, bf16 weights) plus raw
    unpadded PyTorch-layout params for the pure-JAX reference.
    """
    n_layers = len(hidden_size) - 1
    bn_flags = tuple(
        (i < n_layers - 1) or (i == n_layers - 1 and last_activation)
        for i in range(n_layers)
    )
    # dim 0 is only ever a contraction dim -> sublane granule; dims 1.. are output/lane
    # dims (and the next layer's contraction dim) -> pad to 128 for lane-dense stores.
    padded_dims = (_round_up(hidden_size[0], _SUBLANE),) + tuple(
        _round_up(d, _LANE) for d in hidden_size[1:])

    flat = []   # padded params in kernel argument order
    raw = []    # unpadded PyTorch-layout params for the reference forward
    for i in range(n_layers):
        in_dim, out_dim = hidden_size[i], hidden_size[i + 1]
        pin, pout = padded_dims[i], padded_dims[i + 1]
        key, kw, kb = jax.random.split(key, 3)
        bound = 1.0 / (in_dim ** 0.5)
        w = jax.random.uniform(kw, (out_dim, in_dim), jnp.float32, -bound, bound)
        b = jax.random.uniform(kb, (out_dim,), jnp.float32, -bound, bound)

        # Pre-transposed [in, out], zero-padded, stored bf16 (MXU operand dtype).
        w_t = (jnp.zeros((pin, pout), jnp.float32)
               .at[:in_dim, :out_dim].set(w.T)).astype(jnp.bfloat16)

        if bn_flags[i]:
            gamma_p = jnp.zeros((1, pout), jnp.float32).at[:, :out_dim].set(1.0)
            beta_p = jnp.zeros((1, pout), jnp.float32)
            # Padded columns MUST keep gamma = beta = 0 so they remain exactly zero
            # through BN + ReLU and feed zeros into the next layer.
            if pout > out_dim:
                assert float(jnp.max(jnp.abs(gamma_p[:, out_dim:]))) == 0.0
                assert float(jnp.max(jnp.abs(beta_p[:, out_dim:]))) == 0.0
            flat += [w_t, gamma_p, beta_p]   # bias dropped: cancelled by BN mean
            raw.append(dict(w=w, b=b,
                            gamma=jnp.ones((out_dim,), jnp.float32),
                            beta=jnp.zeros((out_dim,), jnp.float32),
                            bn=True))
        else:
            b_p = jnp.zeros((1, pout), jnp.float32).at[:, :out_dim].set(b)
            flat += [w_t, b_p]
            raw.append(dict(w=w, b=b, bn=False))

    return bn_flags, padded_dims, tuple(flat), raw


def make_mlp_forward(hidden_size, bn_flags, padded_dims):
    """Returns a jitted forward(x, flat_params); all structure static."""
    kernel = _make_mlp_kernel(bn_flags)
    in_dim, out_dim = hidden_size[0], hidden_size[-1]
    pin, pout = padded_dims[0], padded_dims[-1]
    n_param_arrays = sum(3 if f else 2 for f in bn_flags)
    vmem = pl.BlockSpec(memory_space=pltpu.MemorySpace.VMEM)

    @jax.jit
    def forward(x, flat_params):
        batch = x.shape[0]
        if pin != in_dim:
            x_p = jnp.zeros((batch, pin), x.dtype).at[:, :in_dim].set(x)
        else:
            x_p = x

        # Right-sized VMEM budget: params + per-layer activations + generous headroom.
        param_bytes = sum(int(p.size) * p.dtype.itemsize for p in flat_params)
        act_bytes = sum(batch * d * 4 for d in padded_dims)
        vmem_bytes = int(param_bytes + 2 * act_bytes + (8 << 20))

        out_p = pl.pallas_call(
            kernel,
            out_shape=jax.ShapeDtypeStruct((batch, pout), jnp.float32),
            in_specs=[vmem] * (1 + n_param_arrays),
            out_specs=vmem,
            compiler_params=pltpu.CompilerParams(vmem_limit_bytes=vmem_bytes),
        )(x_p, *flat_params)
        return out_p[:, :out_dim]

    return forward


def _reference_forward(x, raw_params):
    """Pure-JAX f32 reference with PyTorch training-mode semantics (bias included)."""
    out = x
    for layer in raw_params:
        y = out @ layer["w"].T + layer["b"]
        if layer["bn"]:
            mean = jnp.mean(y, axis=0, keepdims=True)
            var = jnp.mean((y - mean) ** 2, axis=0, keepdims=True)
            y = (y - mean) / jnp.sqrt(var + _BN_EPS)
            y = y * layer["gamma"] + layer["beta"]
            y = jnp.maximum(y, 0.0)
        out = y
    return out


if __name__ == "__main__":
    key = jax.random.PRNGKey(0)
    hidden_size = (32, 64, 32)          # MLP([32, 64, 32], last_activation=True)
    batch = 8

    key, kx, kp = jax.random.split(key, 3)
    x = jax.random.normal(kx, (batch, hidden_size[0]), jnp.float32)

    bn_flags, padded_dims, flat_params, raw_params = init_mlp_params(
        kp, hidden_size, last_activation=True)
    forward = make_mlp_forward(hidden_size, bn_flags, padded_dims)

    out = jax.block_until_ready(forward(x, flat_params))
    ref = _reference_forward(x, raw_params)

    assert out.shape == (batch, hidden_size[-1])
    # bf16 MXU operands with f32 accumulation + f32 BN: element errors are O(1e-2)
    # on the unit-scale (BN-normalized) outputs, well inside this tolerance.
    assert jnp.allclose(out, ref, atol=5e-2, rtol=5e-2), \
        float(jnp.max(jnp.abs(out - ref)))

    print("KERNEL_OK")
</pallas_src>

<mosaic_0001>
module attributes {stable_mosaic.version = 11 : i64} {
  func.func @kernel(%arg0: memref<8x32xf32, #tpu.memory_space<vmem>>, %arg1: memref<32x128xbf16, #tpu.memory_space<vmem>>, %arg2: memref<1x128xf32, #tpu.memory_space<vmem>>, %arg3: memref<1x128xf32, #tpu.memory_space<vmem>>, %arg4: memref<128x128xbf16, #tpu.memory_space<vmem>>, %arg5: memref<1x128xf32, #tpu.memory_space<vmem>>, %arg6: memref<1x128xf32, #tpu.memory_space<vmem>>, %arg7: memref<8x128xf32, #tpu.memory_space<vmem>>) attributes {dimension_semantics = [], scalar_prefetch = 0 : i64, scratch_operands = 0 : i64, tpu.core_type = #tpu.core_type<tc>} {
    %c0 = arith.constant 0 : index
    %c0_0 = arith.constant 0 : index
    %0 = vector.load %arg0[%c0, %c0_0] : memref<8x32xf32, #tpu.memory_space<vmem>>, vector<8x32xf32>
    %1 = arith.truncf %0 : vector<8x32xf32> to vector<8x32xbf16>
    %c0_1 = arith.constant 0 : index
    %c0_2 = arith.constant 0 : index
    %2 = vector.load %arg1[%c0_1, %c0_2] : memref<32x128xbf16, #tpu.memory_space<vmem>>, vector<32x128xbf16>
    %cst = arith.constant dense<0.000000e+00> : vector<8x128xf32>
    %3 = tpu.matmul %1, %2, %cst {dimension_numbers = #tpu.dot_dimension_numbers<[1], [0], [0], [1], [0, 0, 1, 1], [], []>} : vector<8x32xbf16>, vector<32x128xbf16>, vector<8x128xf32> -> vector<8x128xf32>
    %cst_3 = arith.constant dense<0.000000e+00> : vector<128xf32>
    %4 = vector.multi_reduction <add>, %3, %cst_3 [0] : vector<8x128xf32> to vector<128xf32>
    %5 = vector.shape_cast %4 : vector<128xf32> to vector<1x128xf32>
    %cst_4 = arith.constant 8.000000e+00 : f32
    %6 = vector.broadcast %cst_4 : f32 to vector<1x128xf32>
    %7 = arith.divf %5, %6 : vector<1x128xf32>
    %8 = arith.mulf %3, %3 : vector<8x128xf32>
    %cst_5 = arith.constant dense<0.000000e+00> : vector<128xf32>
    %9 = vector.multi_reduction <add>, %8, %cst_5 [0] : vector<8x128xf32> to vector<128xf32>
    %10 = vector.shape_cast %9 : vector<128xf32> to vector<1x128xf32>
    %cst_6 = arith.constant 8.000000e+00 : f32
    %11 = vector.broadcast %cst_6 : f32 to vector<1x128xf32>
    %12 = arith.divf %10, %11 : vector<1x128xf32>
    %13 = arith.mulf %7, %7 : vector<1x128xf32>
    %14 = arith.subf %12, %13 : vector<1x128xf32>
    %cst_7 = arith.constant 0.000000e+00 : f32
    %15 = vector.broadcast %cst_7 : f32 to vector<1x128xf32>
    %16 = arith.maximumf %14, %15 : vector<1x128xf32>
    %c0_8 = arith.constant 0 : index
    %c0_9 = arith.constant 0 : index
    %17 = vector.load %arg2[%c0_8, %c0_9] : memref<1x128xf32, #tpu.memory_space<vmem>>, vector<1x128xf32>
    %cst_10 = arith.constant 9.99999974E-6 : f32
    %18 = vector.broadcast %cst_10 : f32 to vector<1x128xf32>
    %19 = arith.addf %16, %18 : vector<1x128xf32>
    %20 = math.rsqrt %19 : vector<1x128xf32>
    %21 = arith.mulf %17, %20 : vector<1x128xf32>
    %c0_11 = arith.constant 0 : index
    %c0_12 = arith.constant 0 : index
    %22 = vector.load %arg3[%c0_11, %c0_12] : memref<1x128xf32, #tpu.memory_space<vmem>>, vector<1x128xf32>
    %23 = arith.mulf %7, %21 : vector<1x128xf32>
    %24 = arith.subf %22, %23 : vector<1x128xf32>
    %25 = vector.broadcast %21 : vector<1x128xf32> to vector<8x128xf32>
    %26 = arith.mulf %3, %25 : vector<8x128xf32>
    %27 = vector.broadcast %24 : vector<1x128xf32> to vector<8x128xf32>
    %28 = arith.addf %26, %27 : vector<8x128xf32>
    %cst_13 = arith.constant 0.000000e+00 : f32
    %29 = vector.broadcast %cst_13 : f32 to vector<8x128xf32>
    %30 = arith.maximumf %28, %29 : vector<8x128xf32>
    %31 = arith.truncf %30 : vector<8x128xf32> to vector<8x128xbf16>
    %c0_14 = arith.constant 0 : index
    %c0_15 = arith.constant 0 : index
    %32 = vector.load %arg4[%c0_14, %c0_15] : memref<128x128xbf16, #tpu.memory_space<vmem>>, vector<128x128xbf16>
    %cst_16 = arith.constant dense<0.000000e+00> : vector<8x128xf32>
    %33 = tpu.matmul %31, %32, %cst_16 {dimension_numbers = #tpu.dot_dimension_numbers<[1], [0], [0], [1], [0, 0, 1, 1], [], []>} : vector<8x128xbf16>, vector<128x128xbf16>, vector<8x128xf32> -> vector<8x128xf32>
    %cst_17 = arith.constant dense<0.000000e+00> : vector<128xf32>
    %34 = vector.multi_reduction <add>, %33, %cst_17 [0] : vector<8x128xf32> to vector<128xf32>
    %35 = vector.shape_cast %34 : vector<128xf32> to vector<1x128xf32>
    %cst_18 = arith.constant 8.000000e+00 : f32
    %36 = vector.broadcast %cst_18 : f32 to vector<1x128xf32>
    %37 = arith.divf %35, %36 : vector<1x128xf32>
    %38 = arith.mulf %33, %33 : vector<8x128xf32>
    %cst_19 = arith.constant dense<0.000000e+00> : vector<128xf32>
    %39 = vector.multi_reduction <add>, %38, %cst_19 [0] : vector<8x128xf32> to vector<128xf32>
    %40 = vector.shape_cast %39 : vector<128xf32> to vector<1x128xf32>
    %cst_20 = arith.constant 8.000000e+00 : f32
    %41 = vector.broadcast %cst_20 : f32 to vector<1x128xf32>
    %42 = arith.divf %40, %41 : vector<1x128xf32>
    %43 = arith.mulf %37, %37 : vector<1x128xf32>
    %44 = arith.subf %42, %43 : vector<1x128xf32>
    %cst_21 = arith.constant 0.000000e+00 : f32
    %45 = vector.broadcast %cst_21 : f32 to vector<1x128xf32>
    %46 = arith.maximumf %44, %45 : vector<1x128xf32>
    %c0_22 = arith.constant 0 : index
    %c0_23 = arith.constant 0 : index
    %47 = vector.load %arg5[%c0_22, %c0_23] : memref<1x128xf32, #tpu.memory_space<vmem>>, vector<1x128xf32>
    %cst_24 = arith.constant 9.99999974E-6 : f32
    %48 = vector.broadcast %cst_24 : f32 to vector<1x128xf32>
    %49 = arith.addf %46, %48 : vector<1x128xf32>
    %50 = math.rsqrt %49 : vector<1x128xf32>
    %51 = arith.mulf %47, %50 : vector<1x128xf32>
    %c0_25 = arith.constant 0 : index
    %c0_26 = arith.constant 0 : index
    %52 = vector.load %arg6[%c0_25, %c0_26] : memref<1x128xf32, #tpu.memory_space<vmem>>, vector<1x128xf32>
    %53 = arith.mulf %37, %51 : vector<1x128xf32>
    %54 = arith.subf %52, %53 : vector<1x128xf32>
    %55 = vector.broadcast %51 : vector<1x128xf32> to vector<8x128xf32>
    %56 = arith.mulf %33, %55 : vector<8x128xf32>
    %57 = vector.broadcast %54 : vector<1x128xf32> to vector<8x128xf32>
    %58 = arith.addf %56, %57 : vector<8x128xf32>
    %cst_27 = arith.constant 0.000000e+00 : f32
    %59 = vector.broadcast %cst_27 : f32 to vector<8x128xf32>
    %60 = arith.maximumf %58, %59 : vector<8x128xf32>
    %c0_28 = arith.constant 0 : index
    %c0_29 = arith.constant 0 : index
    %61 = vector.load %arg7[%c0_28, %c0_29] : memref<8x128xf32, #tpu.memory_space<vmem>>, vector<8x128xf32>
    tpu.vector_store %arg7[%c0_28, %c0_29], %60 {strides = array<i32>} : memref<8x128xf32, #tpu.memory_space<vmem>>, vector<8x128xf32>,
    return
  }
}

</mosaic_0001>

<bundles_post_ra>
// kernel: forward.1
= control target key start
LH: loop header
LB: loop body
LE: loop exit
PB: predicated region body
PF: predicated region fallthrough
CT: control target
= control target key end

     0   :  { %12 = vsyncpa [#allocation3], 0  ;;  %s535_s0 = inlined_call_operand.hbm [shape: f32[8,32], index: 0, kind: input, shape index: {}]   ;;  %s536_s1 = inlined_call_operand.hbm [shape: bf16[32,128], index: 1, kind: input, shape index: {}]   ;;  %s537_s2 = inlined_call_operand.vmem [shape: f32[1,128], index: 2, kind: input, shape index: {}]   ;;  %s538_s3 = inlined_call_operand.vmem [shape: f32[1,128], index: 3, kind: input, shape index: {}]   ;;  %s539_s4 = inlined_call_operand.hbm [shape: bf16[128,128], index: 4, kind: input, shape index: {}]   ;;  %s540_s5 = inlined_call_operand.vmem [shape: f32[1,128], index: 5, kind: input, shape index: {}]   ;;  %s541_s6 = inlined_call_operand.vmem [shape: f32[1,128], index: 6, kind: input, shape index: {}]   ;;  %s542_s7 = inlined_call_operand.hbm [shape: f32[8,128], index: 7, kind: output, shape index: {}]  }
   0x1   :  { %13 = vsyncpa [#allocation6], 0  ;;  %s30_s26 = sshll.u32 %s536_s1, 4  ;;  %s31_s26 = int_to_ptr.hbm [resolvable:$true] %s30_s26 }
   0x2   :  { %14 = vsyncpa [#allocation4], 0  ;;  %s464_s27 = smov [#allocation5]   ;;  %s20_s8 = sshll.u32 %s535_s0, 4  ;;  %s21_s8 = int_to_ptr.hbm [resolvable:$true] %s20_s8 }
   0x3   :  { %s32_s28 = sshll.u32 %s464_s27, 4  ;;  %s465_s9 = smov 64   ;;  %s33_s28 = int_to_ptr.vmem [resolvable:$true] %s32_s28 }
   0x4   :  { %s466_s10 = smov 4   ;;  %s467_s11 = smov [#allocation2]  }
   0x5   :  { %38 = dma.hbm_to_vmem [thread:$0]  %s31_s26, 256, %s33_s28, [#allocation6], %s465_s9, %s465_s9, %s466_s10  }
   0x6   :  { %s22_s12 = sshll.u32 %s467_s11, 4  ;;  %s47_s15 = sshll.u32 %s539_s4, 4  ;;  %s23_s12 = int_to_ptr.vmem [resolvable:$true] %s22_s12  ;;  %s48_s15 = int_to_ptr.hbm [resolvable:$true] %s47_s15 }
   0x7   :  { %25 = dma.hbm_to_vmem [thread:$0]  %s21_s8, 128, %s23_s12, [#allocation3]  }
   0x8   :  { %s468_s1 = smov [#allocation7]  }
   0x9   :  { %s49_s16 = sshll.u32 %s468_s1, 4  ;;  %s50_s16 = int_to_ptr.vmem [resolvable:$true] %s49_s16 }
   0xa   :  { %55 = dma.hbm_to_vmem [thread:$0]  %s48_s15, 1024, %s50_s16, [#allocation6], %s465_s9, %s465_s9, %s466_s10  }
   0xb   :  { %458 = dma.done.wait [#allocation3], 128  }
   0xc   :  { %459 = vsyncadd [#allocation3], 4294967168 }
   0xd   :  { %460 = dma.done.wait [#allocation6], 1280  }
   0xe   :  { %461 = vsyncadd [#allocation6], 4294966016  ;;  %v340_v0 = vld [vmem:[#allocation5 + $0x8] sm:$0xff]  ;;  %v339_v1 = vld [vmem:[#allocation5] sm:$0xff]  ;;  %vm91_vm0 = vcmask 261120   ;;  %v469_v6 = vmov 8.0  }
   0xf   :  { %101 = vmatpush.bf16.msra.mxu0 %v340_v0  ;;  %v73_v2 = vld [vmem:[#allocation2] sm:$0xff]  ;;  %v348_v4 = vld [vmem:[#allocation7 + $0x38] sm:$0xff]  ;;  %v347_v5 = vld [vmem:[#allocation7 + $0x30] sm:$0xff]  ;;  %356 = vrcp.f32 %v469_v6  ;;  %s470_s21 = smov [#allocation8]  }
  0x10   :  { %v74_v3 = vpack.c.bf16 %v73_v2, %v73_v2  ;;  %223 = vmatpush.bf16.msra.mxu1 %v348_v4  ;;  %v346_v7 = vld [vmem:[#allocation7 + $0x28] sm:$0xff]  ;;  %v345_v9 = vld [vmem:[#allocation7 + $0x20] sm:$0xff]  ;;  %v344_v11 = vld [vmem:[#allocation7 + $0x18] sm:$0xff]  ;;  %s285_s22 = sshll.u32 %s470_s21, 4  ;;  %s286_s22 = int_to_ptr.vmem [resolvable:$true] %s285_s22 }
  0x11   :  { %v343_v13 = vld [vmem:[#allocation7 + $0x10] sm:$0xff]  ;;  %v342_v20 = vld [vmem:[#allocation7 + $0x8] sm:$0xff]  ;;  %v341_v26 = vld [vmem:[#allocation7] sm:$0xff] }
  0x12   :  { %v133_v45 = vld [vmem:[%s537_s2] sm:$0x1] }
  0x13   :  { %102 = vmatpush.bf16.msra.mxu0 %v339_v1  ;;  %v146_v49 = vld [vmem:[%s538_s3] sm:$0x1] }
  0x14   :  { %224 = vmatpush.bf16.msra.mxu1 %v347_v5 }
  0x15   :  { %v357_v8 = vpop.eup %356 }
  0x16   :  { %306 = vmatmul.msk.bf16.vlgmr.msra.gmra.mxu0 %vm91_vm0, %v74_v3  ;;  %v115_v10 = vmul.f32 8.0, %v357_v8  ;;  %vm119_vm1 = vweird.f32 %v357_v8 }
  0x18   :  { %225 = vmatpush.bf16.msra.mxu1 %v346_v7  ;;  %v116_v12 = vsub.f32 1.0, %v115_v10 }
  0x1a   :  { %v117_v17 = vmul.f32 %v357_v8, %v116_v12 }
  0x1c   :  { %226 = vmatpush.bf16.msra.mxu1 %v345_v9  ;;  %v118_v23 = vadd.f32 %v357_v8, %v117_v17 }
  0x1e   :  { %v120_v30 = vsel %vm119_vm1, %v357_v8, %v118_v23 }
  0x20   :  { %227 = vmatpush.bf16.msra.mxu1 %v344_v11 }
  0x24   :  { %228 = vmatpush.bf16.msra.mxu1 %v343_v13 }
  0x28   :  { %229 = vmatpush.bf16.msra.mxu1 %v342_v20  ;;  %v254_v20 = vld [vmem:[%s540_s5] sm:$0x1]  ;;  %s287_s5 = sshll.u32 %s542_s7, 4  ;;  %s288_s5 = int_to_ptr.hbm [resolvable:$true] %s287_s5 }
  0x2c   :  { %230 = vmatpush.bf16.msra.mxu1 %v341_v26 }
  0x93   :  { %v104_v14 = vpop.f32.mrf.mxu0 }
  0x94   :  { %v108_v15 = vrot.slane %v104_v14, 4  ;;  %v122_v16 = vmul.f32 %v104_v14, %v104_v14 }
  0x96   :  { %v109_v18 = vadd.f32 %v108_v15, %v104_v14  ;;  %v123_v19 = vrot.slane %v122_v16, 4 }
  0x98   :  { %v110_v21 = vrot.slane %v109_v18, 2  ;;  %v124_v22 = vadd.f32 %v123_v19, %v122_v16 }
  0x9a   :  { %v111_v24 = vadd.f32 %v110_v21, %v109_v18  ;;  %v125_v25 = vrot.slane %v124_v22, 2 }
  0x9b   :  { %v106_v27 = vpop.f32.mrf.mxu0 }
  0x9c   :  { %v112_v28 = vrot.slane %v111_v24, 1  ;;  %v126_v29 = vadd.f32 %v125_v25, %v124_v22 }
  0x9e   :  { %v113_v31 = vadd.f32 %v112_v28, %v111_v24  ;;  %v127_v32 = vrot.slane %v126_v29, 1  ;;  %v267_v24 = vld [vmem:[%s541_s6] sm:$0x1] }
  0xa0   :  { %v128_v33 = vadd.f32 %v127_v32, %v126_v29  ;;  %v121_v34 = vmul.f32 %v120_v30, %v113_v31 }
  0xa2   :  { %v129_v35 = vmul.f32 %v128_v33, %v120_v30  ;;  %v130_v36 = vmul.f32 %v121_v34, %v121_v34 }
  0xa4   :  { %v131_v37 = vsub.f32 %v129_v35, %v130_v36 }
  0xa6   :  { %v132_v38 = vmax.f32 %v131_v37, 0.0 }
  0xa8   :  { %v134_v39 = vadd.f32 1e-05, %v132_v38 }
  0xaa   :  { %358 = vrsqrt.f32 %v134_v39  ;;  %vm141_vm3 = vweird.f32 %v134_v39 }
  0xb0   :  { %v359_v40 = vpop.eup %358 }
  0xb1   :  { %v136_v41 = vmul.f32 %v359_v40, %v134_v39  ;;  %vm142_vm2 = vweird.f32 %v359_v40 }
  0xb2   :  { %vm143_vm4 = vmor %vm141_vm3, %vm142_vm2 }
  0xb3   :  { %v137_v42 = vmul.f32 %v359_v40, %v136_v41 }
  0xb5   :  { %v138_v43 = vmul.f32 0.5, %v137_v42 }
  0xb7   :  { %v139_v44 = vsub.f32 1.5, %v138_v43 }
  0xb9   :  { %v140_v46 = vmul.f32 %v359_v40, %v139_v44 }
  0xbb   :  { %v144_v47 = vsel %vm143_vm4, %v359_v40, %v140_v46 }
  0xbc   :  { %v145_v48 = vmul.f32 %v144_v47, %v133_v45 }
  0xbe   :  { %v147_v50 = vmul.f32 %v145_v48, %v121_v34  ;;  %v150_v51 = vperm.slane %v145_v48, 0 }
  0xc0   :  { %v148_v52 = vsub.f32 %v146_v49, %v147_v50  ;;  %v152_v53 = vmul.f32 %v150_v51, %v104_v14 }
  0xc2   :  { %v154_v54 = vperm.slane %v148_v52, 0 }
  0xc4   :  { %v156_v55 = vadd.f32 %v154_v54, %v152_v53 }
  0xc6   :  { %v157_v56 = vmax.f32 %v156_v55, 0.0 }
  0xc8   :  { %v158_v57 = vpack.c.bf16 %v157_v56, %v157_v56 }
  0xca   :  { %231 = vmatmul.bf16.vlgmr.msra.gmra.mxu1 %v158_v57 }
 0x147   :  { %v232_v58 = vpop.f32.mrf.mxu1 }
 0x148   :  { %v236_v59 = vrot.slane %v232_v58, 4  ;;  %v243_v60 = vmul.f32 %v232_v58, %v232_v58 }
 0x14a   :  { %v237_v61 = vadd.f32 %v236_v59, %v232_v58  ;;  %v244_v62 = vrot.slane %v243_v60, 4 }
 0x14c   :  { %v238_v63 = vrot.slane %v237_v61, 2  ;;  %v245_v0 = vadd.f32 %v244_v62, %v243_v60 }
 0x14e   :  { %v239_v1 = vadd.f32 %v238_v63, %v237_v61  ;;  %v246_v2 = vrot.slane %v245_v0, 2 }
 0x14f   :  { %v234_v3 = vpop.f32.mrf.mxu1 }
 0x150   :  { %v240_v4 = vrot.slane %v239_v1, 1  ;;  %v247_v5 = vadd.f32 %v246_v2, %v245_v0 }
 0x152   :  { %v241_v6 = vadd.f32 %v240_v4, %v239_v1  ;;  %v248_v7 = vrot.slane %v247_v5, 1 }
 0x154   :  { %v242_v8 = vmul.f32 %v241_v6, %v120_v30  ;;  %v249_v9 = vadd.f32 %v248_v7, %v247_v5 }
 0x156   :  { %v250_v10 = vmul.f32 %v249_v9, %v120_v30  ;;  %v251_v11 = vmul.f32 %v242_v8, %v242_v8 }
 0x158   :  { %v252_v12 = vsub.f32 %v250_v10, %v251_v11 }
 0x15a   :  { %v253_v13 = vmax.f32 %v252_v12, 0.0 }
 0x15c   :  { %v255_v14 = vadd.f32 1e-05, %v253_v13 }
 0x15e   :  { %360 = vrsqrt.f32 %v255_v14  ;;  %vm262_vm6 = vweird.f32 %v255_v14 }
 0x164   :  { %v361_v15 = vpop.eup %360 }
 0x165   :  { %v257_v16 = vmul.f32 %v361_v15, %v255_v14  ;;  %vm263_vm5 = vweird.f32 %v361_v15 }
 0x166   :  { %vm264_vm7 = vmor %vm262_vm6, %vm263_vm5 }
 0x167   :  { %v258_v17 = vmul.f32 %v361_v15, %v257_v16 }
 0x169   :  { %v259_v18 = vmul.f32 0.5, %v258_v17 }
 0x16b   :  { %v260_v19 = vsub.f32 1.5, %v259_v18 }
 0x16d   :  { %v261_v21 = vmul.f32 %v361_v15, %v260_v19 }
 0x16f   :  { %v265_v22 = vsel %vm264_vm7, %v361_v15, %v261_v21 }
 0x170   :  { %v266_v23 = vmul.f32 %v265_v22, %v254_v20 }
 0x172   :  { %v271_v25 = vperm.slane %v266_v23, 0  ;;  %v268_v26 = vmul.f32 %v266_v23, %v242_v8 }
 0x174   :  { %v269_v27 = vsub.f32 %v267_v24, %v268_v26  ;;  %v273_v28 = vmul.f32 %v271_v25, %v232_v58 }
 0x176   :  { %v275_v29 = vperm.slane %v269_v27, 0 }
 0x178   :  { %v277_v30 = vadd.f32 %v275_v29, %v273_v28 }
 0x17a   :  { %v278_v31 = vmax.f32 %v277_v30, 0.0 }
 0x17c   :  { %279 = vst [vmem:[#allocation8] sm:$0xff] %v278_v31 }
 0x17d   :  { %290 = dma.vmem_to_hbm [thread:$0]  %s286_s22, 128, %s288_s5, [#allocation4]  }
 0x17e   :  { %462 = dma.done.wait [#allocation4], 128  }
 0x17f   :  { %463 = vsyncadd [#allocation4], 4294967168 }
 0x180   :  { %295 = vsyncpa [#allocation3], 1 }
 0x181   :  { %296 = vsyncpa [#allocation6], 1 }
 0x182   :  { %297 = vsyncpa [#allocation4], 1 }

</bundles_post_ra>
